<compile_context>
chip_gen: v6e
topology: v6e:2x2x1
jax: 0.10.0
libtpu: 0.0.40
codegen_flags: <defaults>
</compile_context>

<pallas_src>
import math
import functools

import jax
import jax.numpy as jnp
from jax.experimental import pallas as pl
from jax.experimental.pallas import tpu as pltpu


# ----------------------------------------------------------------------------
# Tile picking: largest divisor of `dim` that is <= pref and a multiple of
# `granule` (8 for sublane dims, 128 for lane dims). Falls back to the full
# dimension only if no such divisor exists.
# ----------------------------------------------------------------------------
def _pick_tile(dim, pref, granule=1):
    if dim <= pref:
        return dim
    for cand in range(pref, granule - 1, -1):
        if dim % cand == 0 and cand % granule == 0:
            return cand
    return dim  # last resort: un-tiled


def _default_exp_dtype():
    """bf16 exp on chips with a bf16 EUP (v6e / v7x); f32 elsewhere (v5e)."""
    try:
        kind = jax.devices()[0].device_kind.lower()
    except Exception:
        return jnp.float32
    if "v6" in kind or "v7" in kind:
        return jnp.bfloat16
    return jnp.float32


# ----------------------------------------------------------------------------
# Tiled linear kernel:  out = x @ w + b      (w already transposed to (in, out))
# ----------------------------------------------------------------------------
def _linear_kernel(x_ref, w_ref, b_ref, o_ref, acc_ref):
    @pl.when(pl.program_id(2) == 0)
    def _init():
        acc_ref[...] = jnp.zeros_like(acc_ref)

    x = x_ref[...]
    w = w_ref[...]
    # Activations / weights are pre-cast to bf16 in the wrapper; these casts are
    # no-ops on the hot path (static dtype check at trace time).
    if x.dtype != jnp.bfloat16:
        x = x.astype(jnp.bfloat16)
    if w.dtype != jnp.bfloat16:
        w = w.astype(jnp.bfloat16)
    acc_ref[...] += jnp.dot(x, w, preferred_element_type=jnp.float32)

    @pl.when(pl.program_id(2) == pl.num_programs(2) - 1)
    def _finalize():
        o_ref[...] = (acc_ref[...] + b_ref[...]).astype(o_ref.dtype)


def pallas_linear(x2d, w, b, out_dtype=jnp.bfloat16, *, tm=512, tn=256, tk=512):
    """x2d: (R, K) bf16; w: (K, C) pre-transposed bf16; b: (C,). Returns (R, C)."""
    R, K = x2d.shape
    Kw, C = w.shape
    assert K == Kw
    btm = _pick_tile(R, tm, 8)
    btn = _pick_tile(C, tn, 128)
    btk = _pick_tile(K, tk, 128)
    grid = (R // btm, C // btn, K // btk)

    cost = pl.CostEstimate(
        flops=2 * R * K * C,
        transcendentals=0,
        bytes_accessed=int(
            x2d.size * x2d.dtype.itemsize
            + w.size * w.dtype.itemsize
            + b.size * b.dtype.itemsize
            + R * C * jnp.dtype(out_dtype).itemsize
        ),
    )

    return pl.pallas_call(
        _linear_kernel,
        out_shape=jax.ShapeDtypeStruct((R, C), out_dtype),
        grid=grid,
        in_specs=[
            pl.BlockSpec((btm, btk), lambda i, j, k: (i, k)),
            pl.BlockSpec((btk, btn), lambda i, j, k: (k, j)),
            pl.BlockSpec((1, btn), lambda i, j, k: (0, j)),
        ],
        out_specs=pl.BlockSpec((btm, btn), lambda i, j, k: (i, j)),
        scratch_shapes=[pltpu.VMEM((btm, btn), jnp.float32)],
        compiler_params=pltpu.CompilerParams(
            dimension_semantics=("parallel", "parallel", "arbitrary"),
        ),
        cost_estimate=cost,
    )(x2d, w, b.reshape(1, C))


# ----------------------------------------------------------------------------
# Attention kernel: ONE head of one (batch, q-tile) per grid step.
#   q_ref   : (1, 1, tq, d_k)  bf16   (score scale already folded into W_q/b_q)
#   kt_ref  : (1, 1, d_k, Sk)  bf16   K pre-transposed per head (lane axis = Sk)
#   v_ref   : (1, 1, Sk, d_k)  bf16
#   bias_ref: (1, mb, Sk)      bf16   additive mask bias (0 / -1e9); mb in {1, tq}
#   o_ref   : (1, 1, tq, d_k)         per-head context, written directly
#   a_ref   : (1, 1, tq, Sk)          optional bf16 attention probabilities
# ----------------------------------------------------------------------------
def _attn_kernel(q_ref, kt_ref, v_ref, bias_ref, o_ref, *attn_out, exp_dtype):
    q = q_ref[0, 0]                                   # (tq, d_k)  bf16
    kt = kt_ref[0, 0]                                 # (d_k, Sk)  bf16
    v = v_ref[0, 0]                                   # (Sk, d_k)  bf16
    bias = bias_ref[0]                                # (mb, Sk)   bf16

    # Scores (MXU, contraction over d_k; K already in (d_k, Sk) layout).
    s = jnp.dot(q, kt, preferred_element_type=jnp.float32)       # (tq, Sk) f32
    s = s + bias.astype(jnp.float32)                              # broadcast rows if mb==1

    # Numerically-stable softmax: max / row-sum in f32, exp in exp_dtype
    # (bf16 on v6e/v7x -> ~2x EUP throughput; f32 on v5e).
    m = jnp.max(s, axis=-1, keepdims=True)
    e = jnp.exp((s - m).astype(exp_dtype))                        # (tq, Sk)
    l = jnp.sum(e.astype(jnp.float32), axis=-1, keepdims=True)    # (tq, 1)  f32
    inv_l = pl.reciprocal(l, approx=True)                         # EUP

    # Context (MXU) then normalize only the (tq, d_k) result, not (tq, Sk).
    p = e.astype(jnp.bfloat16)
    ctx = jnp.dot(p, v, preferred_element_type=jnp.float32)       # (tq, d_k) f32
    o_ref[0, 0] = (ctx * inv_l).astype(o_ref.dtype)

    if attn_out:
        attn_out[0][0, 0] = (e.astype(jnp.float32) * inv_l).astype(attn_out[0].dtype)


def pallas_attention(q, kT, v, bias, *, return_attn=False, tq_pref=256,
                     out_dtype=jnp.bfloat16, exp_dtype=None):
    """q: (N, h, Sq, d_k); kT: (N, h, d_k, Sk); v: (N, h, Sk, d_k); bias: (N, Sm, Sk).
    Returns ctx (N, h, Sq, d_k) and optionally probabilities (N, h, Sq, Sk)."""
    N, h, Sq, d_k = q.shape
    Sk = kT.shape[3]
    Sm = bias.shape[1]
    assert Sm in (1, Sq), "mask/bias must be (N, 1, Sk) or (N, Sq, Sk)"
    if exp_dtype is None:
        exp_dtype = _default_exp_dtype()

    btq = _pick_tile(Sq, tq_pref, 8)
    # q-tile axis innermost: the K/V blocks of a (batch, head) are revisited
    # across q-tiles without re-fetching.
    grid = (N, h, Sq // btq)

    mask_per_q = (Sm != 1)
    mb = btq if mask_per_q else 1
    bias_map = ((lambda b, hh, iq: (b, iq, 0)) if mask_per_q
                else (lambda b, hh, iq: (b, 0, 0)))

    in_specs = [
        pl.BlockSpec((1, 1, btq, d_k), lambda b, hh, iq: (b, hh, iq, 0)),
        pl.BlockSpec((1, 1, d_k, Sk), lambda b, hh, iq: (b, hh, 0, 0)),
        pl.BlockSpec((1, 1, Sk, d_k), lambda b, hh, iq: (b, hh, 0, 0)),
        pl.BlockSpec((1, mb, Sk), bias_map),
    ]

    ctx_spec = pl.BlockSpec((1, 1, btq, d_k), lambda b, hh, iq: (b, hh, iq, 0))
    if return_attn:
        out_shape = (jax.ShapeDtypeStruct((N, h, Sq, d_k), out_dtype),
                     jax.ShapeDtypeStruct((N, h, Sq, Sk), jnp.bfloat16))
        out_specs = (ctx_spec,
                     pl.BlockSpec((1, 1, btq, Sk), lambda b, hh, iq: (b, hh, iq, 0)))
    else:
        out_shape = jax.ShapeDtypeStruct((N, h, Sq, d_k), out_dtype)
        out_specs = ctx_spec

    # Scoped-VMEM budget from the actual block sizes (defaults: 16/32 MiB).
    bf16 = 2
    blk_bytes = 2 * bf16 * (btq * d_k + d_k * Sk + Sk * d_k + mb * Sk + btq * d_k)
    if return_attn:
        blk_bytes += 2 * bf16 * btq * Sk
    scratch_bytes = 6 * btq * Sk * 4                 # f32 score-sized temporaries
    vmem_limit = int(min(64 << 20, max(16 << 20, blk_bytes + scratch_bytes + (2 << 20))))

    cost = pl.CostEstimate(
        flops=4 * N * h * Sq * Sk * d_k,
        transcendentals=N * h * Sq * Sk,
        bytes_accessed=int(q.size * bf16 + kT.size * bf16 + v.size * bf16
                           + bias.size * bf16 * h
                           + N * h * Sq * d_k * jnp.dtype(out_dtype).itemsize),
    )

    result = pl.pallas_call(
        functools.partial(_attn_kernel, exp_dtype=exp_dtype),
        out_shape=out_shape,
        grid=grid,
        in_specs=in_specs,
        out_specs=out_specs,
        compiler_params=pltpu.CompilerParams(
            dimension_semantics=("parallel", "parallel", "parallel"),
            vmem_limit_bytes=vmem_limit,
        ),
        cost_estimate=cost,
    )(q, kT, v, bias)

    if return_attn:
        return result[0], result[1]
    return result, None


# ----------------------------------------------------------------------------
# Fused head-merge + output projection:
#   out[b, s, :] = sum_h ctx[b, h, s, :] @ Wo[h] + bo
# Reduction over the head grid axis; (tq, M) output tile stays lane-dense, and
# no transpose of the attention output is ever materialized in HBM.
# ----------------------------------------------------------------------------
def _out_proj_kernel(x_ref, w_ref, b_ref, o_ref, acc_ref):
    @pl.when(pl.program_id(2) == 0)
    def _init():
        acc_ref[...] = jnp.zeros_like(acc_ref)

    acc_ref[...] += jnp.dot(x_ref[0, 0], w_ref[0],
                            preferred_element_type=jnp.float32)

    @pl.when(pl.program_id(2) == pl.num_programs(2) - 1)
    def _finalize():
        o_ref[0] = (acc_ref[...] + b_ref[...]).astype(o_ref.dtype)


def pallas_out_projection(ctx, wo_heads, bo, out_dtype=jnp.float32, *, tq_pref=256):
    """ctx: (N, h, Sq, d_k) bf16; wo_heads: (h, d_k, M) bf16; bo: (M,) f32."""
    N, h, Sq, d_k = ctx.shape
    M = wo_heads.shape[-1]
    btq = _pick_tile(Sq, tq_pref, 8)
    grid = (N, Sq // btq, h)   # head axis = reduction, placed last

    cost = pl.CostEstimate(
        flops=2 * N * Sq * h * d_k * M,
        transcendentals=0,
        bytes_accessed=int(ctx.size * 2 + wo_heads.size * 2 + bo.size * 4
                           + N * Sq * M * jnp.dtype(out_dtype).itemsize),
    )

    return pl.pallas_call(
        _out_proj_kernel,
        out_shape=jax.ShapeDtypeStruct((N, Sq, M), out_dtype),
        grid=grid,
        in_specs=[
            pl.BlockSpec((1, 1, btq, d_k), lambda b, iq, hh: (b, hh, iq, 0)),
            pl.BlockSpec((1, d_k, M), lambda b, iq, hh: (hh, 0, 0)),
            pl.BlockSpec((1, M), lambda b, iq, hh: (0, 0)),
        ],
        out_specs=pl.BlockSpec((1, btq, M), lambda b, iq, hh: (b, iq, 0)),
        scratch_shapes=[pltpu.VMEM((btq, M), jnp.float32)],
        compiler_params=pltpu.CompilerParams(
            dimension_semantics=("parallel", "parallel", "arbitrary"),
        ),
        cost_estimate=cost,
    )(ctx, wo_heads, bo.reshape(1, M))


# ----------------------------------------------------------------------------
# Parameter preparation + forward wrapper
# ----------------------------------------------------------------------------
def prepare_mha_params(params, h):
    """params: ((wq,bq),(wk,bk),(wv,bv),(wo,bo)) in PyTorch layout w=(out,in), b=(out,).
    Pre-transposes once, casts weights to bf16 for the MXU, folds 1/sqrt(d_k)
    into the Q projection, fuses K/V weights into one (M, 2M) matrix and splits
    W_o per head for the fused head-merge output projection."""
    (wq, bq), (wk, bk), (wv, bv), (wo, bo) = params
    M = wq.shape[0]
    assert M % h == 0
    d_k = M // h
    scale = 1.0 / math.sqrt(d_k)
    return dict(
        h=h, M=M, d_k=d_k,
        wq=(wq.T * scale).astype(jnp.bfloat16),                          # (M, M)
        bq=(bq * scale).astype(jnp.float32),
        wkv=jnp.concatenate([wk.T, wv.T], axis=1).astype(jnp.bfloat16),  # (M, 2M)
        bkv=jnp.concatenate([bk, bv], axis=0).astype(jnp.float32),       # (2M,)
        wo_heads=wo.T.reshape(h, d_k, M).astype(jnp.bfloat16),           # (h, d_k, M)
        bo=bo.astype(jnp.float32),
    )


def multi_headed_attention(query, key, value, mask, prepped, *, return_attn=False,
                           out_dtype=jnp.float32):
    """Forward pass equivalent to MultiHeadedAttention.forward (eval mode)."""
    h, M, d_k = prepped["h"], prepped["M"], prepped["d_k"]
    N, Sq, _ = query.shape
    Sk = key.shape[1]

    # Pre-cast activations to bf16 once (halves GEMM activation read bytes and
    # removes the per-tile cast that is re-run for every output-column tile).
    q_in = query.astype(jnp.bfloat16)

    # Q projection (score scale pre-folded), then a one-time relayout to
    # head-major (amortized across all heads / q-tiles of the attention kernel).
    q = pallas_linear(q_in.reshape(N * Sq, M), prepped["wq"], prepped["bq"],
                      out_dtype=jnp.bfloat16)
    q = q.reshape(N, Sq, h, d_k).transpose(0, 2, 1, 3)          # (N, h, Sq, d_k)

    if key is value:
        # Fused K/V projection: the key/value activations are read once.
        kv_in = q_in if key is query else key.astype(jnp.bfloat16)
        kv = pallas_linear(kv_in.reshape(N * Sk, M), prepped["wkv"], prepped["bkv"],
                           out_dtype=jnp.bfloat16)
        kv = kv.reshape(N, Sk, 2, h, d_k)
        k_proj = kv[:, :, 0]                                     # (N, Sk, h, d_k)
        v_proj = kv[:, :, 1]
    else:
        # TODO(synk): rare path (key tensor is not value tensor) projects separately.
        k_proj = pallas_linear(key.astype(jnp.bfloat16).reshape(N * Sk, M),
                               prepped["wkv"][:, :M], prepped["bkv"][:M],
                               out_dtype=jnp.bfloat16).reshape(N, Sk, h, d_k)
        v_proj = pallas_linear(value.astype(jnp.bfloat16).reshape(N * Sk, M),
                               prepped["wkv"][:, M:], prepped["bkv"][M:],
                               out_dtype=jnp.bfloat16).reshape(N, Sk, h, d_k)

    # K pre-transposed ONCE to (d_k, Sk) per head; V to head-major. These are
    # one-time relayouts amortized over every q-tile of the attention kernel.
    kT = k_proj.transpose(0, 2, 3, 1)                            # (N, h, d_k, Sk)
    v_h = v_proj.transpose(0, 2, 1, 3)                           # (N, h, Sk, d_k)

    # Mask folded into an additive bias once (bf16 halves mask HBM reads).
    if mask is None:
        bias = jnp.zeros((N, 1, Sk), jnp.bfloat16)
    else:
        bias = jnp.where(mask == 0, jnp.float32(-1e9),
                         jnp.float32(0.0)).astype(jnp.bfloat16)

    ctx, attn = pallas_attention(q, kT, v_h, bias, return_attn=return_attn)

    # TODO(synk): nn.Dropout(p=0.1) on the attention probabilities: identity (eval).

    out = pallas_out_projection(ctx, prepped["wo_heads"], prepped["bo"],
                                out_dtype=out_dtype)
    return out, attn


# ----------------------------------------------------------------------------
# Pure-JAX reference (f32) for a correctness sanity check
# ----------------------------------------------------------------------------
def reference_mha(x_q, x_k, x_v, mask, raw_params, h):
    (wq, bq), (wk, bk), (wv, bv), (wo, bo) = raw_params
    N, Sq, M = x_q.shape
    d_k = M // h
    lin = lambda x, w, b: x @ w.T + b
    q = lin(x_q, wq, bq).reshape(N, Sq, h, d_k).transpose(0, 2, 1, 3)
    k = lin(x_k, wk, bk).reshape(N, -1, h, d_k).transpose(0, 2, 1, 3)
    v = lin(x_v, wv, bv).reshape(N, -1, h, d_k).transpose(0, 2, 1, 3)
    s = jnp.einsum("nhqd,nhkd->nhqk", q, k) / math.sqrt(d_k)
    s = jnp.where(mask[:, None, :, :] == 0, -1e9, s)
    p = jax.nn.softmax(s, axis=-1)
    ctx = jnp.einsum("nhqk,nhkd->nhqd", p, v)
    ctx = ctx.transpose(0, 2, 1, 3).reshape(N, Sq, M)
    return lin(ctx, wo, bo), p


# ----------------------------------------------------------------------------
# Main
# ----------------------------------------------------------------------------
if __name__ == "__main__":
    key0 = jax.random.PRNGKey(0)
    N, S, M, h = 2, 8, 32, 4   # batch, seq, model dim, heads; d_k = 8
    keys = jax.random.split(key0, 12)

    bound = 1.0 / math.sqrt(M)

    def make_linear(kw, kb):
        w = jax.random.uniform(kw, (M, M), jnp.float32, -bound, bound)
        b = jax.random.uniform(kb, (M,), jnp.float32, -bound, bound)
        return w, b

    raw_params = (
        make_linear(keys[0], keys[1]),   # W_q
        make_linear(keys[2], keys[3]),   # W_k
        make_linear(keys[4], keys[5]),   # W_v
        make_linear(keys[6], keys[7]),   # W_o
    )
    prepped = prepare_mha_params(raw_params, h)

    x = jax.random.normal(keys[8], (N, S, M), jnp.float32)

    # Padding mask (N, 1, S): last two key positions of batch 1 masked out.
    pad_mask = jnp.ones((N, 1, S), jnp.float32).at[1, 0, -2:].set(0.0)

    # Fast path: no attention-probability writeback (flash-style).
    out, _ = multi_headed_attention(x, x, x, pad_mask, prepped, return_attn=False)
    jax.block_until_ready(out)
    assert out.shape == (N, S, M)

    # Optional path: also return the (bf16) attention probabilities.
    out2, attn = multi_headed_attention(x, x, x, pad_mask, prepped, return_attn=True)
    jax.block_until_ready(out2)
    jax.block_until_ready(attn)
    assert attn.shape == (N, h, S, S)

    # Sanity checks vs. the f32 reference (bf16 MXU inputs -> loose tolerance).
    ref_out, ref_p = reference_mha(x, x, x, pad_mask, raw_params, h)
    assert float(jnp.max(jnp.abs(out - ref_out))) < 5e-2
    assert float(jnp.max(jnp.abs(attn.astype(jnp.float32) - ref_p))) < 2e-2
    # Masked key positions of batch 1 must get ~zero probability.
    assert float(jnp.max(attn[1, :, :, -2:].astype(jnp.float32))) < 1e-6

    # Decoder-style per-query (causal) mask (N, S, S) exercises the mb == tq path.
    causal = jnp.broadcast_to(jnp.tril(jnp.ones((S, S), jnp.float32)), (N, S, S))
    out_c, attn_c = multi_headed_attention(x, x, x, causal, prepped, return_attn=True)
    jax.block_until_ready(out_c)
    ref_out_c, ref_p_c = reference_mha(x, x, x, causal, raw_params, h)
    assert float(jnp.max(jnp.abs(out_c - ref_out_c))) < 5e-2
    assert float(jnp.max(jnp.abs(attn_c.astype(jnp.float32) - ref_p_c))) < 2e-2

    print("KERNEL_OK")
</pallas_src>

<mosaic_0001>
module attributes {stable_mosaic.version = 11 : i64} {
  func.func @_linear_kernel(%arg0: i32, %arg1: i32, %arg2: i32, %arg3: memref<16x32xbf16, #tpu.memory_space<vmem>>, %arg4: memref<32x32xbf16, #tpu.memory_space<vmem>>, %arg5: memref<1x32xf32, #tpu.memory_space<vmem>>, %arg6: memref<16x32xbf16, #tpu.memory_space<vmem>>, %arg7: memref<16x32xf32, #tpu.memory_space<vmem>>) attributes {dimension_semantics = [#tpu.dimension_semantics<parallel>, #tpu.dimension_semantics<parallel>, #tpu.dimension_semantics<arbitrary>], iteration_bounds = array<i64: 1, 1, 1>, scalar_prefetch = 0 : i64, scratch_operands = 1 : i64, tpu.core_type = #tpu.core_type<tc>, window_params = [{transform_indices = @transform_0, window_bounds = array<i64: 16, 32>}, {transform_indices = @transform_1, window_bounds = array<i64: 32, 32>}, {transform_indices = @transform_2, window_bounds = array<i64: 1, 32>}, {transform_indices = @transform_3, window_bounds = array<i64: 16, 32>}]} {
    %c0_i32 = arith.constant 0 : i32
    %0 = arith.cmpi eq, %arg2, %c0_i32 : i32
    %1 = arith.extui %0 : i1 to i32
    %c0_i32_0 = arith.constant 0 : i32
    %2 = arith.cmpi ne, %1, %c0_i32_0 : i32
    scf.if %2 {
      %cst_10 = arith.constant 0.000000e+00 : f32
      %12 = vector.broadcast %cst_10 : f32 to vector<16x32xf32>
      %c0_11 = arith.constant 0 : index
      %c0_12 = arith.constant 0 : index
      %13 = vector.load %arg7[%c0_11, %c0_12] : memref<16x32xf32, #tpu.memory_space<vmem>>, vector<16x32xf32>
      tpu.vector_store %arg7[%c0_11, %c0_12], %12 {strides = array<i32>} : memref<16x32xf32, #tpu.memory_space<vmem>>, vector<16x32xf32>,
    } else {
    }
    %c0 = arith.constant 0 : index
    %c0_1 = arith.constant 0 : index
    %3 = vector.load %arg3[%c0, %c0_1] : memref<16x32xbf16, #tpu.memory_space<vmem>>, vector<16x32xbf16>
    %c0_2 = arith.constant 0 : index
    %c0_3 = arith.constant 0 : index
    %4 = vector.load %arg4[%c0_2, %c0_3] : memref<32x32xbf16, #tpu.memory_space<vmem>>, vector<32x32xbf16>
    %c0_4 = arith.constant 0 : index
    %c0_5 = arith.constant 0 : index
    %5 = vector.load %arg7[%c0_4, %c0_5] : memref<16x32xf32, #tpu.memory_space<vmem>>, vector<16x32xf32>
    %cst = arith.constant dense<0.000000e+00> : vector<16x32xf32>
    %6 = tpu.matmul %3, %4, %cst {dimension_numbers = #tpu.dot_dimension_numbers<[1], [0], [0], [1], [0, 0, 1, 1], [], []>} : vector<16x32xbf16>, vector<32x32xbf16>, vector<16x32xf32> -> vector<16x32xf32>
    %7 = arith.addf %5, %6 : vector<16x32xf32>
    %c0_6 = arith.constant 0 : index
    %c0_7 = arith.constant 0 : index
    %8 = vector.load %arg7[%c0_6, %c0_7] : memref<16x32xf32, #tpu.memory_space<vmem>>, vector<16x32xf32>
    tpu.vector_store %arg7[%c0_6, %c0_7], %7 {strides = array<i32>} : memref<16x32xf32, #tpu.memory_space<vmem>>, vector<16x32xf32>,
    %c0_i32_8 = arith.constant 0 : i32
    %9 = arith.cmpi eq, %arg2, %c0_i32_8 : i32
    %10 = arith.extui %9 : i1 to i32
    %c0_i32_9 = arith.constant 0 : i32
    %11 = arith.cmpi ne, %10, %c0_i32_9 : i32
    scf.if %11 {
      %c0_10 = arith.constant 0 : index
      %c0_11 = arith.constant 0 : index
      %12 = vector.load %arg7[%c0_10, %c0_11] : memref<16x32xf32, #tpu.memory_space<vmem>>, vector<16x32xf32>
      %c0_12 = arith.constant 0 : index
      %c0_13 = arith.constant 0 : index
      %13 = vector.load %arg5[%c0_12, %c0_13] : memref<1x32xf32, #tpu.memory_space<vmem>>, vector<1x32xf32>
      %14 = vector.broadcast %13 : vector<1x32xf32> to vector<16x32xf32>
      %15 = arith.addf %12, %14 : vector<16x32xf32>
      %16 = arith.truncf %15 : vector<16x32xf32> to vector<16x32xbf16>
      %c0_14 = arith.constant 0 : index
      %c0_15 = arith.constant 0 : index
      %17 = vector.load %arg6[%c0_14, %c0_15] : memref<16x32xbf16, #tpu.memory_space<vmem>>, vector<16x32xbf16>
      tpu.vector_store %arg6[%c0_14, %c0_15], %16 {strides = array<i32>} : memref<16x32xbf16, #tpu.memory_space<vmem>>, vector<16x32xbf16>,
    } else {
    }
    return
  }
  func.func @transform_0(%arg0: i32, %arg1: i32, %arg2: i32) -> (i32, i32) {
    %c0_i32 = arith.constant 0 : i32
    return %arg0, %arg2 : i32, i32
  }
  func.func @transform_1(%arg0: i32, %arg1: i32, %arg2: i32) -> (i32, i32) {
    %c0_i32 = arith.constant 0 : i32
    return %arg2, %arg1 : i32, i32
  }
  func.func @transform_2(%arg0: i32, %arg1: i32, %arg2: i32) -> (i32, i32) {
    %c0_i32 = arith.constant 0 : i32
    %c0_i32_0 = arith.constant 0 : i32
    return %c0_i32, %arg1 : i32, i32
  }
  func.func @transform_3(%arg0: i32, %arg1: i32, %arg2: i32) -> (i32, i32) {
    %c0_i32 = arith.constant 0 : i32
    return %arg0, %arg1 : i32, i32
  }
}

</mosaic_0001>

<bundles_post_ra>
// kernel: tpu_custom_call.1
= control target key start
LH: loop header
LB: loop body
LE: loop exit
PB: predicated region body
PF: predicated region fallthrough
CT: control target
= control target key end

     0   :  { %8 = vsyncpa [#allocation4], 0  ;;  %s317_s0 = inlined_call_operand.hbm [shape: bf16[16,32], index: 0, kind: input, shape index: {}]   ;;  %s318_s1 = inlined_call_operand.hbm [shape: bf16[32,32], index: 1, kind: input, shape index: {}]   ;;  %s319_s2 = inlined_call_operand.vmem [shape: f32[1,32], index: 2, kind: input, shape index: {}]   ;;  %s320_s3 = inlined_call_operand.hbm [shape: bf16[16,32], index: 3, kind: output, shape index: {}]  }
   0x1   :  { %9 = vsyncpa [#allocation7], 0 }
   0x2   :  { %10 = vsyncpa [#allocation5], 0  ;;  %s264_s12 = smov [#allocation3]  }
   0x3   :  { %s16_s13 = sshll.u32 %s264_s12, 4  ;;  %s17_s13 = int_to_ptr.vmem [resolvable:$true] %s16_s13 }
   0x4   :  { %s206_s14 = scalar_lea.vmem %s17_s13, 128  ;;  %p211_p1 = scmp.lt.s32.totalorder %s17_s13, %s17_s13 }
   0x5   :  { %p207_p0 = scmp.ne.s32.totalorder %s17_s13, %s206_s14  ;;  %p212_p2 = scmp.lt.s32.totalorder %s206_s14, %s206_s14 }
   0x7   :  { %p213_p3 = por %p212_p2, %p211_p1 }
   0x9   :  { %p214_p4 = pnand %p213_p3, %p207_p0 }
   0xb   :  { %217 = shalt.err (!%p214_p4)
}
   0xc   :  { %s265_s15 = smov 64   ;;  %s266_s16 = smov 4  }
   0xd   :  { %22 = dma.hbm_to_vmem [thread:$0]  %s317_s0, 128, %s17_s13, [#allocation4], %s265_s15, %s265_s15, %s266_s16  }
   0xe   :  { %s267_s19 = smov [#allocation6]  }
   0xf   :  { %s28_s20 = sshll.u32 %s267_s19, 4  ;;  %s29_s20 = int_to_ptr.vmem [resolvable:$true] %s28_s20 }
  0x10   :  { %s226_s21 = scalar_lea.vmem %s29_s20, 256  ;;  %p231_p6 = scmp.lt.s32.totalorder %s29_s20, %s29_s20 }
  0x11   :  { %p227_p5 = scmp.ne.s32.totalorder %s29_s20, %s226_s21  ;;  %p232_p7 = scmp.lt.s32.totalorder %s226_s21, %s226_s21 }
  0x13   :  { %p233_p8 = por %p232_p7, %p231_p6 }
  0x15   :  { %p234_p9 = pnand %p233_p8, %p227_p5 }
  0x17   :  { %237 = shalt.err (!%p234_p9)
}
  0x18   :  { %34 = dma.hbm_to_vmem [thread:$0]  %s318_s1, 256, %s29_s20, [#allocation7], %s265_s15, %s265_s15, %s266_s16  }
  0x19   :  { %258 = dma.done.wait [#allocation4], 128  }
  0x1a   :  { %259 = vsyncadd [#allocation4], 4294967168 }
  0x1b   :  { %260 = dma.done.wait [#allocation7], 256  }
  0x1c   :  { %261 = vsyncadd [#allocation7], 4294967040  ;;  %vm48_vm0 = vcmask 261120   ;;  %v268_v0 = vmov 0.0   ;;  %vm269_vm1 = vmmov 0   ;;  %v195_v1 = vld [vmem:[#allocation6 + $0x8] sm:$0xff]  }
  0x1d   :  { %180 = vmatprep.subr.bf16.mxu0 %v268_v0  ;;  %184 = vmatprep.mubr.msk.bf16.mxu0 %vm269_vm1, %v268_v0  ;;  %49 = vst.msk [vmem:[#allocation2] sm:$0xff] %vm48_vm0, %v268_v0  ;;  %50 = vst.msk [vmem:[#allocation2 + $0x8] sm:$0xff] %vm48_vm0, %v268_v0  ;;  %v196_v2 = vld [vmem:[#allocation6] sm:$0xff]   ;;  %v197_v3 = vld [vmem:[#allocation3] sm:$0xff]   ;;  %vm147_vm2 = vcmask 257024   ;;  %s270_s24 = smov [#allocation8]  }
  0x1e   :  { %181 = vmatpush3.bf16.msra.mxu0 %v195_v1  ;;  %v172_v12 = vld [vmem:[%s319_s2] ss:$0 sm:$0xff]  ;;  %s155_s25 = sshll.u32 %s270_s24, 4  ;;  %s156_s25 = int_to_ptr.vmem [resolvable:$true] %s155_s25 }
  0x1f   :  { %182 = vmatprep.subr.bf16.mxu0 %v268_v0  ;;  %s238_s26 = scalar_lea.vmem %s156_s25, 128  ;;  %p243_p11 = scmp.lt.s32.totalorder %s156_s25, %s156_s25 }
  0x20   :  { %p239_p10 = scmp.ne.s32.totalorder %s156_s25, %s238_s26  ;;  %p244_p12 = scmp.lt.s32.totalorder %s238_s26, %s238_s26 }
  0x22   :  { %183 = vmatpush3.bf16.msra.mxu0 %v196_v2  ;;  %p245_p13 = por %p244_p12, %p243_p11 }
  0x24   :  { %v57_v4 = vld [vmem:[#allocation2] sm:$0xff]  ;;  %v58_v8 = vld [vmem:[#allocation2 + $0x8] sm:$0xff]  ;;  %p246_p0 = pnand %p245_p13, %p239_p10 }
  0x25   :  { %185 = vmatmul.mubr.msk.bf16.vlgmr.msra.gmra.mxu0 %vm48_vm0, %v197_v3 }
  0xe5   :  { %v114_v5 = vpop.f32.mrf.mxu0 }
  0xe6   :  { %v121_v6 = vadd.f32 %v114_v5, %v57_v4 }
  0xe7   :  { %v186_v7 = vpop.f32.mrf.mxu0 }
  0xe8   :  { %123 = vst.msk [vmem:[#allocation2] sm:$0xff] %vm48_vm0, %v121_v6 }
  0xe9   :  { %v117_v9 = vpop.f32.mrf.mxu0 }
  0xea   :  { %v122_v10 = vadd.f32 %v117_v9, %v58_v8 }
  0xeb   :  { %v187_v11 = vpop.f32.mrf.mxu0 }
  0xec   :  { %124 = vst.msk [vmem:[#allocation2 + $0x8] sm:$0xff] %vm48_vm0, %v122_v10 }
  0xef   :  { %v128_v13 = vld [vmem:[#allocation2] sm:$0xff] }
  0xf0   :  { %v137_v14 = vadd.f32 %v172_v12, %v128_v13 }
  0xf2   :  { %v175_v15 = vpack.c.bf16 %v137_v14, %v137_v14 }
  0xf3   :  { %v129_v16 = vld [vmem:[#allocation2 + $0x8] sm:$0xff] }
  0xf4   :  { %v138_v17 = vadd.f32 %v172_v12, %v129_v16  ;;  %148 = vst.msk [vmem:[#allocation8] sm:$0xf] %vm147_vm2, %v175_v15 }
  0xf6   :  { %v176_v18 = vpack.c.bf16 %v138_v17, %v138_v17 }
  0xf8   :  { %149 = vst.msk [vmem:[#allocation8 + $0x4] sm:$0xf] %vm147_vm2, %v176_v18 }
  0xf9   :  { %249 = shalt.err (!%p246_p0)
}
  0xfa   :  { %161 = dma.vmem_to_hbm [thread:$0]  %s156_s25, 128, %s320_s3, [#allocation5], %s265_s15, %s265_s15, %s266_s16  }
  0xfb   :  { %262 = dma.done.wait [#allocation5], 128  }
  0xfc   :  { %263 = vsyncadd [#allocation5], 4294967168 }
  0xfd   :  { %165 = vsyncpa [#allocation4], 1 }
  0xfe   :  { %166 = vsyncpa [#allocation7], 1 }
  0xff   :  { %167 = vsyncpa [#allocation5], 1 }

</bundles_post_ra>
